<compile_context>
chip_gen: v7x
topology: tpu7x:2x2x1
jax: 0.10.0
libtpu: 0.0.40
codegen_flags: <defaults>
</compile_context>

<pallas_src>
import jax
import jax.numpy as jnp
from jax.experimental import pallas as pl
from jax.experimental.pallas import tpu as pltpu


def _linreg_kernel(a_ref, b_ref, x_ref, o_ref):
    # a_ref / b_ref: (1,) f32 scalars in SMEM -> scalar reads, off the vector path.
    a = a_ref[0]
    b = b_ref[0]
    # Upcast narrow inputs in-vreg (no-op for f32); one VPU mul+add per tile.
    y = a + b * x_ref[...].astype(jnp.float32)
    o_ref[...] = y.astype(o_ref.dtype)


def _pick_tiling(block_rows, vmem_limit_bytes):
    """Per-generation defaults: bigger tiles on 128 MiB-VMEM chips (v5e/v6e),
    4 MiB blocks / 32 MiB scoped limit cap elsewhere (v7x: 64 MiB VMEM/TC)."""
    rows, limit = 1024, 32 * 1024 * 1024            # safe everywhere
    try:
        info = pltpu.get_tpu_info()
        vmem = getattr(info, "vmem_capacity_bytes", None)
        if vmem is not None and vmem >= 128 * 1024 * 1024:
            rows, limit = 2048, 64 * 1024 * 1024    # v5e / v6e
    except Exception:
        pass
    if block_rows is not None:
        rows = block_rows
    if vmem_limit_bytes is not None:
        limit = vmem_limit_bytes
    return rows, limit


def manual_linear_regression(x, a, b, *, block_rows=None, lane_width=1024,
                             single_block_max=64 * 1024,
                             vmem_limit_bytes=None):
    """Forward pass of ManualLinearRegression: y = a + b * x.

    x: float array of any shape (the PyTorch module uses (N, 1)); dtype preserved.
    a, b: shape-(1,) float32 parameters.
    """
    orig_shape = x.shape
    out_dtype = x.dtype if jnp.issubdtype(x.dtype, jnp.floating) else jnp.float32
    x = x.astype(out_dtype)                          # no-op for floating inputs
    a = jnp.asarray(a, jnp.float32).reshape(1)
    b = jnp.asarray(b, jnp.float32).reshape(1)

    flat = x.reshape(-1)
    total = flat.shape[0]
    if total == 0:                                   # empty input: nothing to do
        return jnp.zeros(orig_shape, out_dtype)

    block_rows, vmem_limit_bytes = _pick_tiling(block_rows, vmem_limit_bytes)

    if total <= single_block_max:
        # Tiny input: one block covering the whole (padded) slab, grid=(1,).
        width = lane_width if total >= lane_width else 128
        rows = pl.cdiv(total, width)
        tile_rows = rows                             # block == full array dims
    else:
        # Streaming: lane-dense multi-MiB tiles; cdiv grid so the last row-block
        # is partial (masked by Pallas) -- no padding to block granularity.
        width = lane_width
        rows = pl.cdiv(total, width)
        # >= 2 row-blocks so the "parallel" axis feeds both v7x TensorCores.
        half = ((pl.cdiv(rows, 2) + 7) // 8) * 8
        tile_rows = min(block_rows, half)

    padded = rows * width
    needs_pad = padded != total
    if needs_pad:
        # Pad only up to the next multiple of `width` (< width extra elements).
        flat = jnp.pad(flat, (0, padded - total))
    slab = flat.reshape(rows, width)

    grid = (pl.cdiv(rows, tile_rows),)

    out = pl.pallas_call(
        _linreg_kernel,
        out_shape=jax.ShapeDtypeStruct((rows, width), out_dtype),
        grid_spec=pl.GridSpec(
            grid=grid,
            in_specs=[
                pl.BlockSpec(memory_space=pltpu.MemorySpace.SMEM),   # a (1,)
                pl.BlockSpec(memory_space=pltpu.MemorySpace.SMEM),   # b (1,)
                pl.BlockSpec((tile_rows, width), lambda i: (i, 0)),  # x tile
            ],
            out_specs=pl.BlockSpec((tile_rows, width), lambda i: (i, 0)),
        ),
        compiler_params=pltpu.CompilerParams(
            dimension_semantics=("parallel",),   # megacore / v7x dual-TC sharding
            vmem_limit_bytes=vmem_limit_bytes,
        ),
    )(a, b, slab)

    # Slice is a no-op path when no padding was added.
    if needs_pad:
        return out.reshape(-1)[:total].reshape(orig_shape)
    return out.reshape(orig_shape)


if __name__ == "__main__":
    key = jax.random.PRNGKey(0)
    kx, ka, kb, kx2, kx3 = jax.random.split(key, 5)

    # mirrors np.random.uniform(0, 1, [n, 1]) with the spec's n = 1000
    n = 1000
    x = jax.random.uniform(kx, (n, 1), dtype=jnp.float32)

    # parameters: torch.randn(1) each, here deterministic normal draws
    a = jax.random.normal(ka, (1,), dtype=jnp.float32)
    b = jax.random.normal(kb, (1,), dtype=jnp.float32)

    # 1) Tiny-input path: single block, grid=(1,), padded 1000 -> 1024 (8x128 slab)
    y = manual_linear_regression(x, a, b)
    jax.block_until_ready(y)
    y_ref = a + b * x
    assert y.shape == (n, 1) and y.dtype == jnp.float32
    assert jnp.allclose(y, y_ref, atol=1e-6, rtol=1e-6)

    # 2) Streaming path: multi-block grid with a partial (masked) last block
    n2 = 3333
    x2 = jax.random.uniform(kx2, (n2, 1), dtype=jnp.float32)
    y2 = manual_linear_regression(x2, a, b, block_rows=8, lane_width=128,
                                  single_block_max=1024)
    jax.block_until_ready(y2)
    y2_ref = a + b * x2
    assert y2.shape == (n2, 1)
    assert jnp.allclose(y2, y2_ref, atol=1e-6, rtol=1e-6)

    # 3) bf16 input: dtype preserved end-to-end (half the HBM bytes), no pad/slice
    n3 = 2048
    x3 = jax.random.uniform(kx3, (n3, 1), dtype=jnp.float32).astype(jnp.bfloat16)
    y3 = manual_linear_regression(x3, a, b)
    jax.block_until_ready(y3)
    y3_ref = (a + b * x3.astype(jnp.float32)).astype(jnp.bfloat16)
    assert y3.shape == (n3, 1) and y3.dtype == jnp.bfloat16
    assert jnp.allclose(y3.astype(jnp.float32), y3_ref.astype(jnp.float32),
                        atol=1e-2, rtol=1e-2)

    print("KERNEL_OK")
</pallas_src>

<mosaic_0001>
module attributes {stable_mosaic.version = 11 : i64} {
  func.func @_linreg_kernel(%arg0: i32, %arg1: memref<1xf32, #tpu.memory_space<smem>>, %arg2: memref<1xf32, #tpu.memory_space<smem>>, %arg3: memref<8x128xf32, #tpu.memory_space<vmem>>, %arg4: memref<8x128xf32, #tpu.memory_space<vmem>>) attributes {dimension_semantics = [#tpu.dimension_semantics<parallel>], iteration_bounds = array<i64: 1>, scalar_prefetch = 0 : i64, scratch_operands = 0 : i64, tpu.core_type = #tpu.core_type<tc>, window_params = [{transform_indices = @transform_0, window_bounds = array<i64: 1>}, {transform_indices = @transform_1, window_bounds = array<i64: 1>}, {transform_indices = @transform_2, window_bounds = array<i64: 8, 128>}, {transform_indices = @transform_3, window_bounds = array<i64: 8, 128>}]} {
    %c0 = arith.constant 0 : index
    %0 = memref.load %arg1[%c0] : memref<1xf32, #tpu.memory_space<smem>>
    %c0_0 = arith.constant 0 : index
    %1 = memref.load %arg2[%c0_0] : memref<1xf32, #tpu.memory_space<smem>>
    %c0_1 = arith.constant 0 : index
    %c0_2 = arith.constant 0 : index
    %2 = vector.load %arg3[%c0_1, %c0_2] : memref<8x128xf32, #tpu.memory_space<vmem>>, vector<8x128xf32>
    %3 = vector.broadcast %1 : f32 to vector<8x128xf32>
    %4 = arith.mulf %3, %2 : vector<8x128xf32>
    %5 = vector.broadcast %0 : f32 to vector<8x128xf32>
    %6 = arith.addf %5, %4 : vector<8x128xf32>
    %c0_3 = arith.constant 0 : index
    %c0_4 = arith.constant 0 : index
    %7 = vector.load %arg4[%c0_3, %c0_4] : memref<8x128xf32, #tpu.memory_space<vmem>>, vector<8x128xf32>
    tpu.vector_store %arg4[%c0_3, %c0_4], %6 {strides = array<i32>} : memref<8x128xf32, #tpu.memory_space<vmem>>, vector<8x128xf32>,
    return
  }
  func.func @transform_0(%arg0: i32) -> i32 {
    %c0_i32 = arith.constant 0 : i32
    %c0_i32_0 = arith.constant 0 : i32
    return %c0_i32 : i32
  }
  func.func @transform_1(%arg0: i32) -> i32 {
    %c0_i32 = arith.constant 0 : i32
    %c0_i32_0 = arith.constant 0 : i32
    return %c0_i32 : i32
  }
  func.func @transform_2(%arg0: i32) -> (i32, i32) {
    %c0_i32 = arith.constant 0 : i32
    %c0_i32_0 = arith.constant 0 : i32
    return %arg0, %c0_i32 : i32, i32
  }
  func.func @transform_3(%arg0: i32) -> (i32, i32) {
    %c0_i32 = arith.constant 0 : i32
    %c0_i32_0 = arith.constant 0 : i32
    return %arg0, %c0_i32 : i32, i32
  }
}

</mosaic_0001>

<bundles_post_ra>
// kernel: tpu_custom_call.1
= control target key start
LH: loop header
LB: loop body
LE: loop exit
PB: predicated region body
PF: predicated region fallthrough
CT: control target
= control target key end

     0   :  { %10 = vsyncpa [#allocation5], 0  ;;  %s154_s0 = inlined_call_operand.<no memory space> [shape: f32[1], index: 0, kind: input, shape index: {}]   ;;  %s155_s1 = inlined_call_operand.<no memory space> [shape: f32[1], index: 1, kind: input, shape index: {}]   ;;  %s156_s2 = inlined_call_operand.hbm [shape: f32[8,128], index: 2, kind: input, shape index: {}]   ;;  %s157_s3 = inlined_call_operand.hbm [shape: f32[8,128], index: 3, kind: output, shape index: {}]  }
   0x1   :  { %11 = vsyncpa [#allocation6], 0  ;;  %s102_s12 = smov [#allocation4]   ;;  %s54_s16 = scalar_lea.hbm %s156_s2, 128 }
   0x2   :  { %s22_s13 = sshll.u32 %s102_s12, 4  ;;  %p55_p0 = scmp.ne.s32.totalorder %s156_s2, %s54_s16  ;;  %s23_s13 = int_to_ptr.vmem [resolvable:$true] %s22_s13 }
   0x3   :  { %p58_p1 = scmp.lt.u32.totalorder %s54_s16, %s156_s2 }
   0x5   :  { %p60_p2 = pnand %p58_p1, %p55_p0 }
   0x7   :  { %63 = shalt.err (!%p60_p2)
}
   0x8   :  { %s64_s21 = scalar_lea.vmem %s23_s13, 128  ;;  %p69_p4 = scmp.lt.s32.totalorder %s23_s13, %s23_s13 }
   0x9   :  { %p65_p3 = scmp.ne.s32.totalorder %s23_s13, %s64_s21  ;;  %p70_p5 = scmp.lt.s32.totalorder %s64_s21, %s64_s21 }
   0xb   :  { %p71_p6 = por %p70_p5, %p69_p4 }
   0xd   :  { %p72_p7 = pnand %p71_p6, %p65_p3 }
   0xf   :  { %75 = shalt.err (!%p72_p7)
}
  0x10   :  { %25 = dma.hbm_to_vmem [thread:$0]  %s156_s2, 128, %s23_s13, [#allocation5]  }
  0x11   :  { %98 = dma.done.wait [#allocation5], 128  }
  0x12   :  { %99 = vsyncadd [#allocation5], 4294967168  ;;  %v32_v0 = vstv %s155_s1  ;;  %v31_v1 = vld [vmem:[#allocation4] sm:$0xff]  ;;  %v34_v2 = vstv %s154_s0  ;;  %s103_s28 = smov [#allocation7]  }
  0x13   :  { %s43_s29 = sshll.u32 %s103_s28, 4  ;;  %v33_v3 = vmul.f32 %v32_v0, %v31_v1  ;;  %s44_s29 = int_to_ptr.vmem [resolvable:$true] %s43_s29 }
  0x14   :  { %s76_s30 = scalar_lea.vmem %s44_s29, 128  ;;  %p81_p9 = scmp.lt.s32.totalorder %s44_s29, %s44_s29 }
  0x15   :  { %v35_v4 = vadd.f32 %v34_v2, %v33_v3  ;;  %p77_p8 = scmp.ne.s32.totalorder %s44_s29, %s76_s30  ;;  %p82_p10 = scmp.lt.s32.totalorder %s76_s30, %s76_s30 }
  0x17   :  { %36 = vst [vmem:[#allocation7] sm:$0xff] %v35_v4  ;;  %p83_p11 = por %p82_p10, %p81_p9 }
  0x19   :  { %p84_p12 = pnand %p83_p11, %p77_p8 }
  0x1b   :  { %87 = shalt.err (!%p84_p12)
}
  0x1c   :  { %s88_s4 = scalar_lea.hbm %s157_s3, 128 }
  0x1d   :  { %p89_p13 = scmp.ne.s32.totalorder %s157_s3, %s88_s4  ;;  %p92_p0 = scmp.lt.u32.totalorder %s88_s4, %s157_s3 }
  0x1f   :  { %p94_p1 = pnand %p92_p0, %p89_p13 }
  0x21   :  { %97 = shalt.err (!%p94_p1)
}
  0x22   :  { %46 = dma.vmem_to_hbm [thread:$0]  %s44_s29, 128, %s157_s3, [#allocation6]  }
  0x23   :  { %100 = dma.done.wait [#allocation6], 128  }
  0x24   :  { %101 = vsyncadd [#allocation6], 4294967168 }
  0x25   :  { %50 = vsyncpa [#allocation5], 1 }
  0x26   :  { %51 = vsyncpa [#allocation6], 1 }

</bundles_post_ra>
